<compile_context>
chip_gen: v5e
topology: v5e:2x2
jax: 0.10.0
libtpu: 0.0.40
codegen_flags: <defaults>
</compile_context>

<pallas_src>
import jax
import jax.numpy as jnp
import numpy as np
from jax.experimental import pallas as pl
from jax.experimental.pallas import tpu as pltpu

MAX_LENGTH = 77   # BERTTokenizer default max_length
CLS_ID = 101      # [CLS]
SEP_ID = 102      # [SEP]
PAD_ID = 0        # [PAD]

_LANE = 128       # lane-dense padded sequence width (multiple of 128)
_TB = 8           # batch tile (sublane-aligned)


def bert_tokenizer_forward(content_ids, lengths, max_length=MAX_LENGTH):
    """Numeric tail of BERTTokenizer.forward.

    content_ids: (B, L) int32 WordPiece ids of the text (no special tokens).
    lengths:     (B,)   int32 number of valid content tokens per row.
    Returns (B, max_length) int32 input_ids (== HF 'input_ids' with
    truncation=True, padding='max_length').
    """
    B, L = content_ids.shape
    cap = max_length - 2                                   # room for [CLS]/[SEP]
    lane = ((max_length + _LANE - 1) // _LANE) * _LANE     # lane-dense width
    b_pad = ((B + _TB - 1) // _TB) * _TB                   # sublane-aligned batch

    content_ids = content_ids.astype(jnp.int32)
    lengths = jnp.minimum(lengths.astype(jnp.int32), jnp.int32(L))

    # Pure data movement in the wrapper: shift content right by one so that
    # position j (1-based) of the padded buffer holds content token j-1.
    keep = min(L, cap)
    raw = jnp.zeros((b_pad, lane), jnp.int32)
    raw = raw.at[:B, 1:1 + keep].set(content_ids[:, :keep])
    len2 = jnp.zeros((b_pad, 1), jnp.int32)
    len2 = len2.at[:B, 0].set(lengths)

    def kernel(len_ref, raw_ref, out_ref):
        # len_ref: (TB, 1)    valid content-token count per row
        # raw_ref: (TB, lane) content ids, shifted right by one
        # out_ref: (TB, lane) packed input_ids (lane-padded)
        n = jnp.minimum(len_ref[...], cap)                          # (TB, 1)
        j = jax.lax.broadcasted_iota(jnp.int32, raw_ref.shape, 1)   # (TB, lane)
        raw_v = raw_ref[...]
        ids = jnp.where(j == 0, CLS_ID,
              jnp.where(j <= n, raw_v,
              jnp.where(j == n + 1, SEP_ID, PAD_ID)))
        # keep the lane padding beyond max_length at PAD
        out_ref[...] = jnp.where(j < max_length, ids, PAD_ID).astype(out_ref.dtype)

    out = pl.pallas_call(
        kernel,
        out_shape=jax.ShapeDtypeStruct((b_pad, lane), jnp.int32),
        grid_spec=pltpu.PrefetchScalarGridSpec(
            num_scalar_prefetch=0,
            grid=(b_pad // _TB,),
            in_specs=[
                pl.BlockSpec((_TB, 1), lambda i: (i, 0)),      # lengths
                pl.BlockSpec((_TB, lane), lambda i: (i, 0)),   # shifted content ids
            ],
            out_specs=pl.BlockSpec((_TB, lane), lambda i: (i, 0)),
        ),
        compiler_params=pltpu.CompilerParams(
            dimension_semantics=("parallel",)),
    )(len2, raw)

    return out[:B, :max_length]


def _reference(content_ids, lengths, max_length=MAX_LENGTH):
    """Pure numpy reference of the CLS/content/SEP/PAD packing."""
    content_ids = np.asarray(content_ids)
    lengths = np.asarray(lengths)
    B, L = content_ids.shape
    out = np.zeros((B, max_length), np.int32)
    out[:, 0] = CLS_ID
    for b in range(B):
        n = int(min(int(lengths[b]), max_length - 2, L))
        out[b, 1:1 + n] = content_ids[b, :n]
        out[b, 1 + n] = SEP_ID
    return jnp.asarray(out)


if __name__ == "__main__":
    key = jax.random.PRNGKey(0)
    k_ids, _ = jax.random.split(key)

    # Deterministic synthetic "pre-tokenized" WordPiece ids (no HF download).
    B, L = 2, 96
    content_ids = jax.random.randint(k_ids, (B, L), 1000, 29000, dtype=jnp.int32)
    lengths = jnp.array([20, 90], dtype=jnp.int32)   # second row exercises truncation

    out = bert_tokenizer_forward(content_ids, lengths)
    out = jax.block_until_ready(out)
    assert out.shape == (B, MAX_LENGTH), out.shape

    ref = _reference(content_ids, lengths)
    assert bool(jnp.all(out == ref)), "mismatch vs reference"

    print("KERNEL_OK")
</pallas_src>

<mosaic_0001>
module attributes {stable_mosaic.version = 11 : i64} {
  func.func @kernel(%arg0: i32, %arg1: memref<8x1xi32, #tpu.memory_space<vmem>>, %arg2: memref<8x128xi32, #tpu.memory_space<vmem>>, %arg3: memref<8x128xi32, #tpu.memory_space<vmem>>) attributes {dimension_semantics = [#tpu.dimension_semantics<parallel>], iteration_bounds = array<i64: 1>, scalar_prefetch = 0 : i64, scratch_operands = 0 : i64, tpu.core_type = #tpu.core_type<tc>, window_params = [{transform_indices = @transform_0, window_bounds = array<i64: 8, 1>}, {transform_indices = @transform_1, window_bounds = array<i64: 8, 128>}, {transform_indices = @transform_2, window_bounds = array<i64: 8, 128>}]} {
    %c0 = arith.constant 0 : index
    %c0_0 = arith.constant 0 : index
    %0 = vector.load %arg1[%c0, %c0_0] : memref<8x1xi32, #tpu.memory_space<vmem>>, vector<8x1xi32>
    %c75_i32 = arith.constant 75 : i32
    %1 = vector.broadcast %c75_i32 : i32 to vector<8x1xi32>
    %2 = arith.minsi %0, %1 : vector<8x1xi32>
    %3 = tpu.iota {dimensions = array<i32: 1>} : vector<8x128xi32>
    %c0_1 = arith.constant 0 : index
    %c0_2 = arith.constant 0 : index
    %4 = vector.load %arg2[%c0_1, %c0_2] : memref<8x128xi32, #tpu.memory_space<vmem>>, vector<8x128xi32>
    %c0_i32 = arith.constant 0 : i32
    %5 = vector.broadcast %c0_i32 : i32 to vector<8x128xi32>
    %6 = arith.cmpi eq, %3, %5 : vector<8x128xi32>
    %7 = vector.broadcast %2 : vector<8x1xi32> to vector<8x128xi32>
    %8 = arith.cmpi sle, %3, %7 : vector<8x128xi32>
    %c1_i32 = arith.constant 1 : i32
    %9 = vector.broadcast %c1_i32 : i32 to vector<8x1xi32>
    %10 = arith.addi %2, %9 : vector<8x1xi32>
    %11 = vector.broadcast %10 : vector<8x1xi32> to vector<8x128xi32>
    %12 = arith.cmpi eq, %3, %11 : vector<8x128xi32>
    %c102_i32 = arith.constant 102 : i32
    %c0_i32_3 = arith.constant 0 : i32
    %13 = vector.broadcast %c102_i32 : i32 to vector<8x128xi32>
    %14 = vector.broadcast %c0_i32_3 : i32 to vector<8x128xi32>
    %15 = arith.select %12, %13, %14 : vector<8x128xi1>, vector<8x128xi32>
    %16 = arith.select %8, %4, %15 : vector<8x128xi1>, vector<8x128xi32>
    %c101_i32 = arith.constant 101 : i32
    %17 = vector.broadcast %c101_i32 : i32 to vector<8x128xi32>
    %18 = arith.select %6, %17, %16 : vector<8x128xi1>, vector<8x128xi32>
    %c77_i32 = arith.constant 77 : i32
    %19 = vector.broadcast %c77_i32 : i32 to vector<8x128xi32>
    %20 = arith.cmpi slt, %3, %19 : vector<8x128xi32>
    %c0_i32_4 = arith.constant 0 : i32
    %21 = vector.broadcast %c0_i32_4 : i32 to vector<8x128xi32>
    %22 = arith.select %20, %18, %21 : vector<8x128xi1>, vector<8x128xi32>
    %c0_5 = arith.constant 0 : index
    %c0_6 = arith.constant 0 : index
    %23 = vector.load %arg3[%c0_5, %c0_6] : memref<8x128xi32, #tpu.memory_space<vmem>>, vector<8x128xi32>
    tpu.vector_store %arg3[%c0_5, %c0_6], %22 {strides = array<i32>} : memref<8x128xi32, #tpu.memory_space<vmem>>, vector<8x128xi32>,
    return
  }
  func.func @transform_0(%arg0: i32) -> (i32, i32) {
    %c0_i32 = arith.constant 0 : i32
    %c0_i32_0 = arith.constant 0 : i32
    return %arg0, %c0_i32 : i32, i32
  }
  func.func @transform_1(%arg0: i32) -> (i32, i32) {
    %c0_i32 = arith.constant 0 : i32
    %c0_i32_0 = arith.constant 0 : i32
    return %arg0, %c0_i32 : i32, i32
  }
  func.func @transform_2(%arg0: i32) -> (i32, i32) {
    %c0_i32 = arith.constant 0 : i32
    %c0_i32_0 = arith.constant 0 : i32
    return %arg0, %c0_i32 : i32, i32
  }
}

</mosaic_0001>

<bundles_post_ra>
// kernel: tpu_custom_call.1
= control target key start
LH: loop header
LB: loop body
LE: loop exit
PB: predicated region body
PF: predicated region fallthrough
CT: control target
= control target key end

     0   :  { %s105_s0 = inlined_call_operand.vmem [shape: s32[8,1], index: 0, kind: input, shape index: {}]   ;;  %s106_s1 = inlined_call_operand.vmem [shape: s32[8,128], index: 1, kind: input, shape index: {}]   ;;  %s107_s2 = inlined_call_operand.hbm [shape: s32[8,128], index: 2, kind: output, shape index: {}]  }
   0x1   :  { %v12_v0 = vld [vmem:[%s105_s0] sm:$0xff] }
   0x2   :  { %7 = vsyncpa [#allocation3], 0  ;;  %v79_v1 = vmov 0   ;;  %vm13_vm0 = vcmp.lt.s32.totalorder %v12_v0, 75  ;;  %v15_v4 = vlaneseq  ;;  %v17_v7 = vld [vmem:[%s106_s1] sm:$0xff]  ;;  %s80_s13 = smov [#allocation2]  }
   0x3   :  { %52 = vset.pattern.permute.xlu0 %v79_v1  ;;  %v14_v2 = vsel %vm13_vm0, %v12_v0, 75  ;;  %s39_s0 = sshll.u32 %s80_s13, 4  ;;  %s41_s16 = sshll.u32 %s107_s2, 4  ;;  %s40_s0 = int_to_ptr.vmem [resolvable:$true] %s39_s0  ;;  %s42_s16 = int_to_ptr.hbm [resolvable:$true] %s41_s16 }
   0x4   :  { %v23_v3 = vadd.s32 1, %v14_v2  ;;  %v16_v6 = vand.u32 127, %v15_v4 }
   0x6   :  { %25 = vperm.xlu0 %52, %v23_v3   ;;  %vm18_vm2 = vcmp.eq.s32.totalorder %v16_v6, 0  ;;  %vm31_vm4 = vcmp.lt.s32.totalorder %v16_v6, 77 }
   0xe   :  { %20 = vperm.xlu0 %52, %v14_v2  }
  0x78   :  { %v26_v5 = vpop.permute.xlu0 %25 }
  0x79   :  { %vm27_vm1 = vcmp.eq.s32.totalorder %v16_v6, %v26_v5 }
  0x7a   :  { %v28_v9 = vsel %vm27_vm1, 102, %v79_v1 }
  0x80   :  { %v21_v8 = vpop.permute.xlu0 %20 }
  0x81   :  { %vm22_vm3 = vcmp.le.s32.totalorder %v16_v6, %v21_v8 }
  0x82   :  { %v29_v10 = vsel %vm22_vm3, %v17_v7, %v28_v9 }
  0x83   :  { %v30_v11 = vsel %vm18_vm2, 101, %v29_v10 }
  0x84   :  { %v32_v12 = vsel %vm31_vm4, %v30_v11, 0 }
  0x85   :  { %33 = vst [vmem:[#allocation2] sm:$0xff] %v32_v12 }
  0x86   :  { %44 = dma.vmem_to_hbm [thread:$0]  %s40_s0, 128, %s42_s16, [#allocation3]  }
  0x87   :  { %77 = dma.done.wait [#allocation3], 128  }
  0x88   :  { %78 = vsyncadd [#allocation3], 4294967168 }
  0x89   :  { %49 = vsyncpa [#allocation3], 1 }

</bundles_post_ra>
